<compile_context>
chip_gen: v6e
topology: v6e:2x2x1
jax: 0.10.0
libtpu: 0.0.40
codegen_flags: <defaults>
</compile_context>

<pallas_src>
import math

import jax
import jax.numpy as jnp
from jax.experimental import pallas as pl
from jax.experimental.pallas import tpu as pltpu

LANES = 128
SUBLANES = 8
MAX_TILE_ROWS = 1024      # 1024 x 128 f32 = 512 KiB per input block
_MIN_SPLIT_ROWS = 512     # never shrink the row tile below this just to split

_EPS = 1e-4
_LOG_EPS = math.log(_EPS)
_LOG_1M_EPS = math.log(1.0 - _EPS)


# --------------------------- hardware / layout helpers -----------------------


def _num_tensorcores():
    """Best-effort TensorCores-per-chip: 2 on v7x, else 1 (v5e / v6e)."""
    # (pltpu.get_tpu_info() could be used here as well; device_kind is the
    #  most portable signal and defaulting to 1 is always correct.)
    try:
        kind = jax.devices()[0].device_kind.lower()
        if "v7" in kind or "7x" in kind:
            return 2
    except Exception:
        pass
    return 1


def _to_rows(x, pad_value):
    """Flatten to a lane-dense (rows, 128) slab; rows is a multiple of 8.

    Only the (rare) sub-vreg tail is padded; typical NCHW tensors with
    numel % 1024 == 0 pass through with just a reshape (no pad copy).
    The pad value is chosen so padded elements contribute exactly 0.
    """
    flat = x.reshape(-1)
    rem = (-flat.shape[0]) % (SUBLANES * LANES)
    if rem:
        flat = jnp.pad(flat, (0, rem), constant_values=pad_value)
    return flat.reshape(-1, LANES)


def _tiling(rows, nsplit, max_tile_rows):
    """Pick (nsplit, tile_rows, tiles_per_split, nblocks, needs_mask)."""
    if nsplit > 1 and rows < nsplit * _MIN_SPLIT_ROWS:
        nsplit = 1                               # splitting would hurt tile size
    tile = min(max_tile_rows, pl.cdiv(rows, nsplit))
    tile = ((tile + SUBLANES - 1) // SUBLANES) * SUBLANES
    tile = min(tile, rows)                       # rows is always a multiple of 8
    tps = pl.cdiv(rows, tile * nsplit)           # row tiles per split
    nblocks = pl.cdiv(rows, tile)                # genuine (non-redundant) blocks
    needs_mask = (nsplit * tps * tile != rows)   # grid overruns the array?
    return nsplit, tile, tps, nblocks, needs_mask


def _row_map(tps, nblocks):
    """Input index_map over row blocks; clamps redundant trailing blocks
    (possible when nsplit does not divide the block count) onto the last real
    block — the in-kernel row mask zeroes their contribution."""
    def imap(c, t):
        return (jnp.minimum(c * tps + t, nblocks - 1), 0)
    return imap


def _valid_rows(tile, tps, rows):
    """(tile, 1) bool mask of rows that are inside the real array."""
    row0 = (pl.program_id(0) * tps + pl.program_id(1)) * tile
    return (jax.lax.broadcasted_iota(jnp.int32, (tile, 1), 0) + row0) < rows


def _rowsum(x):
    """(tile, 128) -> (8, 128) partial sums: pure vreg adds, no XLU reduce."""
    return jnp.sum(x.reshape(-1, SUBLANES, LANES), axis=0)


# ------------------------------- kernels -------------------------------------


def _make_focal_kernel(nstack, rows, tile, tps, needs_mask):
    """Fused _sigmoid + _neg_loss partial sums for all stacks of one tile."""

    def kernel(*refs):
        heat_refs = refs[:nstack]
        gt_ref = refs[nstack]
        pos_ref, neg_ref, npos_ref = refs[nstack + 1:nstack + 4]

        @pl.when(pl.program_id(1) == 0)
        def _init():
            pos_ref[...] = jnp.zeros_like(pos_ref)
            neg_ref[...] = jnp.zeros_like(neg_ref)
            npos_ref[...] = jnp.zeros_like(npos_ref)

        gt = gt_ref[...].astype(jnp.float32)
        if needs_mask:
            valid = _valid_rows(tile, tps, rows)
            gt = jnp.where(valid, gt, 2.0)       # gt=2 -> pos_mask=0, neg_w=0

        pos_mask = jnp.where(gt == 1.0, 1.0, 0.0)      # pos_inds = gt.eq(1)
        omg = 1.0 - gt
        omg2 = omg * omg
        neg_w = jnp.where(gt < 1.0, omg2 * omg2, 0.0)  # neg_inds * (1-gt)^4

        npos_ref[0] += _rowsum(pos_mask)

        for s in range(nstack):                  # static unroll; gt stays live
            x = heat_refs[s][...].astype(jnp.float32)
            if needs_mask:
                x = jnp.where(valid, x, 0.0)     # keep garbage/NaN out of math
            # sigmoid via tanh: 2 EUP ops (tanh, log); no exp / reciprocal.
            p_raw = 0.5 + 0.5 * jnp.tanh(0.5 * x)
            log_p_raw = jnp.log(p_raw)
            # clamp(sigmoid, 1e-4, 1-1e-4) applied in log space (monotone).
            log_p = jnp.clip(log_p_raw, _LOG_EPS, _LOG_1M_EPS)
            log_1mp = jnp.clip(log_p_raw - x, _LOG_EPS, _LOG_1M_EPS)
            p = jnp.clip(p_raw, _EPS, 1.0 - _EPS)
            one_mp = 1.0 - p

            pos_ref[0, s] += _rowsum(log_p * (one_mp * one_mp) * pos_mask)
            neg_ref[0, s] += _rowsum(log_1mp * (p * p) * neg_w)

    return kernel


def _make_l1_kernel(nstack, rows, tile, tps, needs_mask):
    """Fused masked-L1 (offsets + sizes) partial sums for all stacks."""

    def kernel(*refs):
        off_refs = refs[:nstack]
        size_refs = refs[nstack:2 * nstack]
        gto_ref = refs[2 * nstack]
        gts_ref = refs[2 * nstack + 1]
        off_sum_ref, size_sum_ref, cnt_ref = refs[2 * nstack + 2:2 * nstack + 5]

        @pl.when(pl.program_id(1) == 0)
        def _init():
            off_sum_ref[...] = jnp.zeros_like(off_sum_ref)
            size_sum_ref[...] = jnp.zeros_like(size_sum_ref)
            cnt_ref[...] = jnp.zeros_like(cnt_ref)

        gts = gts_ref[...].astype(jnp.float32)
        gto = gto_ref[...].astype(jnp.float32)
        if needs_mask:
            valid = _valid_rows(tile, tps, rows)
            gts = jnp.where(valid, gts, 0.0)     # mask -> 0 on invalid rows
            gto = jnp.where(valid, gto, 0.0)

        m = jnp.where(gts != 0.0, 1.0, 0.0)      # mask = ~gt_sizes.eq(0)
        cnt_ref[0] += _rowsum(m)

        for s in range(nstack):
            o = off_refs[s][...].astype(jnp.float32)
            z = size_refs[s][...].astype(jnp.float32)
            if needs_mask:
                o = jnp.where(valid, o, 0.0)
                z = jnp.where(valid, z, 0.0)
            off_sum_ref[0, s] += _rowsum(jnp.abs(o - gto) * m)
            size_sum_ref[0, s] += _rowsum(jnp.abs(z - gts) * m)

    return kernel


# ------------------------------ wrappers --------------------------------------


def focal_terms(heat_logits_list, gt, *, max_tile_rows=MAX_TILE_ROWS, nsplit=None):
    """Per-stack (pos_sum, neg_sum) and num_pos, computed in one pallas_call."""
    nstack = len(heat_logits_list)
    if nsplit is None:
        nsplit = _num_tensorcores()

    gt2 = _to_rows(gt, 2.0)                       # pad 2.0 -> both masks 0
    heats = [_to_rows(h, 0.0) for h in heat_logits_list]   # no stacking
    rows = gt2.shape[0]
    nsplit, tile, tps, nblocks, needs_mask = _tiling(rows, nsplit, max_tile_rows)

    imap = _row_map(tps, nblocks)
    n_elem = rows * LANES
    in_bytes = sum(int(h.dtype.itemsize) for h in heats) + int(gt2.dtype.itemsize)
    cost = pl.CostEstimate(flops=(8 + 20 * nstack) * n_elem,
                           transcendentals=2 * nstack * n_elem,
                           bytes_accessed=in_bytes * n_elem)

    pos, neg, npos = pl.pallas_call(
        _make_focal_kernel(nstack, rows, tile, tps, needs_mask),
        out_shape=(
            jax.ShapeDtypeStruct((nsplit, nstack, SUBLANES, LANES), jnp.float32),
            jax.ShapeDtypeStruct((nsplit, nstack, SUBLANES, LANES), jnp.float32),
            jax.ShapeDtypeStruct((nsplit, SUBLANES, LANES), jnp.float32),
        ),
        grid=(nsplit, tps),
        in_specs=[pl.BlockSpec((tile, LANES), imap) for _ in range(nstack)]
                + [pl.BlockSpec((tile, LANES), imap)],
        out_specs=(
            pl.BlockSpec((1, nstack, SUBLANES, LANES), lambda c, t: (c, 0, 0, 0)),
            pl.BlockSpec((1, nstack, SUBLANES, LANES), lambda c, t: (c, 0, 0, 0)),
            pl.BlockSpec((1, SUBLANES, LANES), lambda c, t: (c, 0, 0)),
        ),
        compiler_params=pltpu.CompilerParams(
            dimension_semantics=("parallel", "arbitrary")),
        cost_estimate=cost,
    )(*heats, gt2)

    return (jnp.sum(pos, axis=(0, 2, 3)),        # (nstack,)
            jnp.sum(neg, axis=(0, 2, 3)),        # (nstack,)
            jnp.sum(npos))                       # scalar


def l1_terms(offsets_list, sizes_list, gt_offsets, gt_sizes, *,
             max_tile_rows=MAX_TILE_ROWS, nsplit=None):
    """Per-stack masked-L1 sums for offsets & sizes, plus mask count."""
    nstack = len(offsets_list)
    if nsplit is None:
        nsplit = _num_tensorcores()
    if gt_offsets.size != gt_sizes.size:
        raise ValueError("fused L1 kernel assumes gt_offsets / gt_sizes have "
                         "equal element counts")

    gto = _to_rows(gt_offsets, 0.0)
    gts = _to_rows(gt_sizes, 0.0)                 # pad 0.0 -> mask 0 on tail
    offs = [_to_rows(o, 0.0) for o in offsets_list]
    sizs = [_to_rows(z, 0.0) for z in sizes_list]
    rows = gts.shape[0]
    nsplit, tile, tps, nblocks, needs_mask = _tiling(rows, nsplit, max_tile_rows)

    imap = _row_map(tps, nblocks)
    n_elem = rows * LANES
    in_bytes = (sum(int(o.dtype.itemsize) for o in offs)
                + sum(int(z.dtype.itemsize) for z in sizs)
                + int(gto.dtype.itemsize) + int(gts.dtype.itemsize))
    cost = pl.CostEstimate(flops=(4 + 8 * nstack) * n_elem,
                           transcendentals=0,
                           bytes_accessed=in_bytes * n_elem)

    off_sums, size_sums, cnt = pl.pallas_call(
        _make_l1_kernel(nstack, rows, tile, tps, needs_mask),
        out_shape=(
            jax.ShapeDtypeStruct((nsplit, nstack, SUBLANES, LANES), jnp.float32),
            jax.ShapeDtypeStruct((nsplit, nstack, SUBLANES, LANES), jnp.float32),
            jax.ShapeDtypeStruct((nsplit, SUBLANES, LANES), jnp.float32),
        ),
        grid=(nsplit, tps),
        in_specs=[pl.BlockSpec((tile, LANES), imap) for _ in range(2 * nstack)]
                + [pl.BlockSpec((tile, LANES), imap),
                   pl.BlockSpec((tile, LANES), imap)],
        out_specs=(
            pl.BlockSpec((1, nstack, SUBLANES, LANES), lambda c, t: (c, 0, 0, 0)),
            pl.BlockSpec((1, nstack, SUBLANES, LANES), lambda c, t: (c, 0, 0, 0)),
            pl.BlockSpec((1, SUBLANES, LANES), lambda c, t: (c, 0, 0)),
        ),
        compiler_params=pltpu.CompilerParams(
            dimension_semantics=("parallel", "arbitrary")),
        cost_estimate=cost,
    )(*offs, *sizs, gto, gts)

    return (jnp.sum(off_sums, axis=(0, 2, 3)),   # (nstack,)
            jnp.sum(size_sums, axis=(0, 2, 3)),  # (nstack,)
            jnp.sum(cnt))                        # scalar


def ae_loss_forward(outs, targets, *, offsets_weight=1.0, sizes_weight=1.0,
                    max_tile_rows=MAX_TILE_ROWS, nsplit=None):
    """JAX/Pallas equivalent of AELoss.forward(outs, targets)."""
    stride = 3
    heats = outs[0::stride]
    offsets = outs[1::stride]
    sizes = outs[2::stride]
    nstack = len(heats)

    # TODO(synk): these concatenations mirror torch.cat in the module but cost
    # one extra HBM read+write pass per gt tensor; removing them would require
    # channel-aware 4-D BlockSpec indexing of the un-concatenated targets.
    gt_heats = jnp.concatenate([targets[0], targets[1]], axis=1)
    gt_offsets = jnp.concatenate([targets[2], targets[3]], axis=1)
    gt_sizes = jnp.concatenate([targets[4], targets[5]], axis=1)

    if nsplit is None:
        nsplit = _num_tensorcores()

    # focal (_sigmoid + _neg_loss), all stacks fused in one kernel
    pos, neg, npos = focal_terms(heats, gt_heats,
                                 max_tile_rows=max_tile_rows, nsplit=nsplit)
    safe_npos = jnp.maximum(npos, 1.0)   # guard divide in untaken where-branch
    per_stack = jnp.where(npos == 0.0, -neg, -(pos + neg) / safe_npos)
    focal_loss = jnp.sum(per_stack)

    # masked L1 for offsets + sizes, all stacks fused; mask computed in-kernel.
    off_sums, size_sums, cnt = l1_terms(offsets, sizes, gt_offsets, gt_sizes,
                                        max_tile_rows=max_tile_rows,
                                        nsplit=nsplit)
    denom = cnt + 1e-4
    offsets_loss = offsets_weight * jnp.sum(off_sums / denom)
    sizes_loss = sizes_weight * jnp.sum(size_sums / denom)

    loss = (focal_loss + offsets_loss + sizes_loss) / nstack
    return loss, focal_loss, sizes_loss, offsets_loss


# --------------------------- pure-JAX reference -------------------------------


def _reference_forward(outs, targets, *, offsets_weight=1.0, sizes_weight=1.0):
    stride = 3
    heats = outs[0::stride]
    offsets = outs[1::stride]
    sizes = outs[2::stride]
    gt_heats = jnp.concatenate([targets[0], targets[1]], axis=1)
    gt_offsets = jnp.concatenate([targets[2], targets[3]], axis=1)
    gt_sizes = jnp.concatenate([targets[4], targets[5]], axis=1)
    mask = (gt_sizes != 0).astype(jnp.float32)

    pos_mask = (gt_heats == 1.0).astype(jnp.float32)
    neg_mask = (gt_heats < 1.0).astype(jnp.float32)
    npos = jnp.sum(pos_mask)
    focal = jnp.float32(0.0)
    for h in heats:
        p = jnp.clip(jax.nn.sigmoid(h.astype(jnp.float32)), 1e-4, 1 - 1e-4)
        pos = jnp.sum(jnp.log(p) * (1 - p) ** 2 * pos_mask)
        neg = jnp.sum(jnp.log(1 - p) * p ** 2 * (1 - gt_heats) ** 4 * neg_mask)
        focal = focal + jnp.where(
            npos == 0, -neg, -(pos + neg) / jnp.maximum(npos, 1.0))

    cnt = jnp.sum(mask)
    off_l = sum(jnp.sum(jnp.abs(o - gt_offsets) * mask) / (cnt + 1e-4)
                for o in offsets)
    size_l = sum(jnp.sum(jnp.abs(z - gt_sizes) * mask) / (cnt + 1e-4)
                 for z in sizes)
    offsets_loss = offsets_weight * off_l
    sizes_loss = sizes_weight * size_l
    loss = (focal + offsets_loss + sizes_loss) / len(heats)
    return loss, focal, sizes_loss, offsets_loss


# -------------------------------- demo ----------------------------------------


if __name__ == "__main__":
    nstack = 2
    B, H, W = 3, 16, 16
    c_heat, c_off, c_size = 2, 2, 2  # per-branch channels (concat -> 4 each)

    key = jax.random.PRNGKey(0)
    ks = jax.random.split(key, 8 + nstack)

    # ---- targets: [heat0, heat1, off0, off1, size0, size1] (NCHW) ----
    gt_heat0 = jax.random.uniform(ks[0], (B, c_heat, H, W), jnp.float32, 0.0, 0.9)
    gt_heat1 = jax.random.uniform(ks[1], (B, c_heat, H, W), jnp.float32, 0.0, 0.9)
    gt_heat0 = gt_heat0.at[:, :, ::8, ::8].set(1.0)
    gt_heat1 = gt_heat1.at[:, :, ::8, 4::8].set(1.0)

    gt_off0 = jax.random.normal(ks[2], (B, c_off, H, W), jnp.float32)
    gt_off1 = jax.random.normal(ks[3], (B, c_off, H, W), jnp.float32)

    sparse0 = (jax.random.uniform(ks[4], (B, c_size, H, W)) < 0.1).astype(jnp.float32)
    sparse1 = (jax.random.uniform(ks[5], (B, c_size, H, W)) < 0.1).astype(jnp.float32)
    gt_size0 = jax.random.uniform(ks[6], (B, c_size, H, W), jnp.float32, 1.0, 5.0) * sparse0
    gt_size1 = jax.random.uniform(ks[7], (B, c_size, H, W), jnp.float32, 1.0, 5.0) * sparse1

    targets = [gt_heat0, gt_heat1, gt_off0, gt_off1, gt_size0, gt_size1]

    # ---- outs: per stack [heat_logits, offsets, sizes] flattened (stride 3) ----
    outs = []
    for s in range(nstack):
        k_h, k_o, k_s = jax.random.split(ks[8 + s], 3)
        outs.append(jax.random.normal(k_h, (B, 2 * c_heat, H, W), jnp.float32))
        outs.append(jax.random.normal(k_o, (B, 2 * c_off, H, W), jnp.float32))
        outs.append(jax.random.normal(k_s, (B, 2 * c_size, H, W), jnp.float32))

    # max_tile_rows=16 on rows=24 forces several grid steps plus a ragged final
    # block, exercising accumulator init and the in-kernel row-validity mask.
    got = ae_loss_forward(outs, targets, offsets_weight=1.0, sizes_weight=1.0,
                          max_tile_rows=16)
    got = jax.block_until_ready(got)
    want = jax.block_until_ready(
        _reference_forward(outs, targets, offsets_weight=1.0, sizes_weight=1.0))

    names = ("loss", "focal_loss", "sizes_loss", "offsets_loss")
    ok = True
    for name, g, w in zip(names, got, want):
        g, w = float(g), float(w)
        if not math.isfinite(g) or abs(g - w) > 2e-2 * abs(w) + 1e-2:
            ok = False
            print(f"MISMATCH {name}: got {g}, want {w}")
    if not ok:
        raise SystemExit(1)
    print("KERNEL_OK")
</pallas_src>

<mosaic_0001>
module attributes {stable_mosaic.version = 11 : i64} {
  func.func @kernel(%arg0: i32, %arg1: i32, %arg2: memref<16x128xf32, #tpu.memory_space<vmem>>, %arg3: memref<16x128xf32, #tpu.memory_space<vmem>>, %arg4: memref<16x128xf32, #tpu.memory_space<vmem>>, %arg5: memref<1x2x8x128xf32, #tpu.memory_space<vmem>>, %arg6: memref<1x2x8x128xf32, #tpu.memory_space<vmem>>, %arg7: memref<1x8x128xf32, #tpu.memory_space<vmem>>) attributes {dimension_semantics = [#tpu.dimension_semantics<parallel>, #tpu.dimension_semantics<arbitrary>], iteration_bounds = array<i64: 1, 2>, scalar_prefetch = 0 : i64, scratch_operands = 0 : i64, tpu.core_type = #tpu.core_type<tc>, window_params = [{transform_indices = @transform_0, window_bounds = array<i64: 16, 128>}, {transform_indices = @transform_1, window_bounds = array<i64: 16, 128>}, {transform_indices = @transform_2, window_bounds = array<i64: 16, 128>}, {transform_indices = @transform_3, window_bounds = array<i64: 1, 2, 8, 128>}, {transform_indices = @transform_4, window_bounds = array<i64: 1, 2, 8, 128>}, {transform_indices = @transform_5, window_bounds = array<i64: 1, 8, 128>}]} {
    %c0_i32 = arith.constant 0 : i32
    %0 = arith.cmpi eq, %arg1, %c0_i32 : i32
    %1 = arith.extui %0 : i1 to i32
    %c0_i32_0 = arith.constant 0 : i32
    %2 = arith.cmpi ne, %1, %c0_i32_0 : i32
    scf.if %2 {
      %cst_76 = arith.constant 0.000000e+00 : f32
      %137 = vector.broadcast %cst_76 : f32 to vector<1x2x8x128xf32>
      %c0_77 = arith.constant 0 : index
      %c0_78 = arith.constant 0 : index
      %c0_79 = arith.constant 0 : index
      %c0_80 = arith.constant 0 : index
      %138 = vector.load %arg5[%c0_77, %c0_78, %c0_79, %c0_80] : memref<1x2x8x128xf32, #tpu.memory_space<vmem>>, vector<1x2x8x128xf32>
      tpu.vector_store %arg5[%c0_77, %c0_78, %c0_79, %c0_80], %137 {strides = array<i32>} : memref<1x2x8x128xf32, #tpu.memory_space<vmem>>, vector<1x2x8x128xf32>,
      %cst_81 = arith.constant 0.000000e+00 : f32
      %139 = vector.broadcast %cst_81 : f32 to vector<1x2x8x128xf32>
      %c0_82 = arith.constant 0 : index
      %c0_83 = arith.constant 0 : index
      %c0_84 = arith.constant 0 : index
      %c0_85 = arith.constant 0 : index
      %140 = vector.load %arg6[%c0_82, %c0_83, %c0_84, %c0_85] : memref<1x2x8x128xf32, #tpu.memory_space<vmem>>, vector<1x2x8x128xf32>
      tpu.vector_store %arg6[%c0_82, %c0_83, %c0_84, %c0_85], %139 {strides = array<i32>} : memref<1x2x8x128xf32, #tpu.memory_space<vmem>>, vector<1x2x8x128xf32>,
      %cst_86 = arith.constant 0.000000e+00 : f32
      %141 = vector.broadcast %cst_86 : f32 to vector<1x8x128xf32>
      %c0_87 = arith.constant 0 : index
      %c0_88 = arith.constant 0 : index
      %c0_89 = arith.constant 0 : index
      %142 = vector.load %arg7[%c0_87, %c0_88, %c0_89] : memref<1x8x128xf32, #tpu.memory_space<vmem>>, vector<1x8x128xf32>
      tpu.vector_store %arg7[%c0_87, %c0_88, %c0_89], %141 {strides = array<i32>} : memref<1x8x128xf32, #tpu.memory_space<vmem>>, vector<1x8x128xf32>,
    } else {
    }
    %c0 = arith.constant 0 : index
    %c0_1 = arith.constant 0 : index
    %3 = vector.load %arg4[%c0, %c0_1] : memref<16x128xf32, #tpu.memory_space<vmem>>, vector<16x128xf32>
    %c2_i32 = arith.constant 2 : i32
    %4 = arith.muli %arg0, %c2_i32 : i32
    %5 = arith.addi %4, %arg1 : i32
    %c16_i32 = arith.constant 16 : i32
    %6 = arith.muli %5, %c16_i32 : i32
    %7 = tpu.iota {dimensions = array<i32: 0>} : vector<16x1xi32>
    %8 = vector.broadcast %6 : i32 to vector<16x1xi32>
    %9 = arith.addi %7, %8 : vector<16x1xi32>
    %c24_i32 = arith.constant 24 : i32
    %10 = vector.broadcast %c24_i32 : i32 to vector<16x1xi32>
    %11 = arith.cmpi slt, %9, %10 : vector<16x1xi32>
    %cst = arith.constant 2.000000e+00 : f32
    %12 = vector.shape_cast %11 : vector<16x1xi1> to vector<16x1xi1>
    %13 = vector.broadcast %12 : vector<16x1xi1> to vector<16x128xi1>
    %14 = vector.broadcast %cst : f32 to vector<16x128xf32>
    %15 = arith.select %13, %3, %14 : vector<16x128xi1>, vector<16x128xf32>
    %cst_2 = arith.constant 1.000000e+00 : f32
    %16 = vector.broadcast %cst_2 : f32 to vector<16x128xf32>
    %17 = arith.cmpf oeq, %15, %16 : vector<16x128xf32>
    %cst_3 = arith.constant 1.000000e+00 : f32
    %cst_4 = arith.constant 0.000000e+00 : f32
    %18 = vector.broadcast %cst_3 : f32 to vector<16x128xf32>
    %19 = vector.broadcast %cst_4 : f32 to vector<16x128xf32>
    %20 = arith.select %17, %18, %19 : vector<16x128xi1>, vector<16x128xf32>
    %cst_5 = arith.constant 1.000000e+00 : f32
    %21 = vector.broadcast %cst_5 : f32 to vector<16x128xf32>
    %22 = arith.subf %21, %15 : vector<16x128xf32>
    %23 = arith.mulf %22, %22 : vector<16x128xf32>
    %cst_6 = arith.constant 1.000000e+00 : f32
    %24 = vector.broadcast %cst_6 : f32 to vector<16x128xf32>
    %25 = arith.cmpf olt, %15, %24 : vector<16x128xf32>
    %26 = arith.mulf %23, %23 : vector<16x128xf32>
    %cst_7 = arith.constant 0.000000e+00 : f32
    %27 = vector.broadcast %cst_7 : f32 to vector<16x128xf32>
    %28 = arith.select %25, %26, %27 : vector<16x128xi1>, vector<16x128xf32>
    %c0_8 = arith.constant 0 : index
    %c0_9 = arith.constant 0 : index
    %c0_10 = arith.constant 0 : index
    %29 = vector.load %arg7[%c0_8, %c0_9, %c0_10] : memref<1x8x128xf32, #tpu.memory_space<vmem>>, vector<1x8x128xf32>
    %30 = vector.shape_cast %29 : vector<1x8x128xf32> to vector<8x128xf32>
    %31 = vector.shape_cast %20 : vector<16x128xf32> to vector<2x8x128xf32>
    %cst_11 = arith.constant dense<0.000000e+00> : vector<8x128xf32>
    %32 = vector.multi_reduction <add>, %31, %cst_11 [0] : vector<2x8x128xf32> to vector<8x128xf32>
    %33 = arith.addf %30, %32 : vector<8x128xf32>
    %c0_12 = arith.constant 0 : index
    %c0_13 = arith.constant 0 : index
    %c0_14 = arith.constant 0 : index
    %34 = vector.load %arg7[%c0_12, %c0_13, %c0_14] : memref<1x8x128xf32, #tpu.memory_space<vmem>>, vector<1x8x128xf32>
    %35 = vector.shape_cast %34 : vector<1x8x128xf32> to vector<8x128xf32>
    %36 = vector.shape_cast %33 : vector<8x128xf32> to vector<1x8x128xf32>
    tpu.vector_store %arg7[%c0_12, %c0_13, %c0_14], %36 {strides = array<i32>} : memref<1x8x128xf32, #tpu.memory_space<vmem>>, vector<1x8x128xf32>,
    %c0_15 = arith.constant 0 : index
    %c0_16 = arith.constant 0 : index
    %37 = vector.load %arg2[%c0_15, %c0_16] : memref<16x128xf32, #tpu.memory_space<vmem>>, vector<16x128xf32>
    %cst_17 = arith.constant 0.000000e+00 : f32
    %38 = vector.shape_cast %11 : vector<16x1xi1> to vector<16x1xi1>
    %39 = vector.broadcast %38 : vector<16x1xi1> to vector<16x128xi1>
    %40 = vector.broadcast %cst_17 : f32 to vector<16x128xf32>
    %41 = arith.select %39, %37, %40 : vector<16x128xi1>, vector<16x128xf32>
    %cst_18 = arith.constant 5.000000e-01 : f32
    %42 = vector.broadcast %cst_18 : f32 to vector<16x128xf32>
    %43 = arith.mulf %42, %41 : vector<16x128xf32>
    %44 = math.tanh %43 : vector<16x128xf32>
    %cst_19 = arith.constant 5.000000e-01 : f32
    %45 = vector.broadcast %cst_19 : f32 to vector<16x128xf32>
    %46 = arith.mulf %45, %44 : vector<16x128xf32>
    %cst_20 = arith.constant 5.000000e-01 : f32
    %47 = vector.broadcast %cst_20 : f32 to vector<16x128xf32>
    %48 = arith.addf %47, %46 : vector<16x128xf32>
    %49 = math.log %48 : vector<16x128xf32>
    %cst_21 = arith.constant -9.21034049 : f32
    %cst_22 = arith.constant -1.000050e-04 : f32
    %50 = vector.broadcast %cst_21 : f32 to vector<16x128xf32>
    %51 = arith.maximumf %50, %49 : vector<16x128xf32>
    %52 = vector.broadcast %cst_22 : f32 to vector<16x128xf32>
    %53 = arith.minimumf %52, %51 : vector<16x128xf32>
    %54 = arith.subf %49, %41 : vector<16x128xf32>
    %cst_23 = arith.constant -9.21034049 : f32
    %cst_24 = arith.constant -1.000050e-04 : f32
    %55 = vector.broadcast %cst_23 : f32 to vector<16x128xf32>
    %56 = arith.maximumf %55, %54 : vector<16x128xf32>
    %57 = vector.broadcast %cst_24 : f32 to vector<16x128xf32>
    %58 = arith.minimumf %57, %56 : vector<16x128xf32>
    %cst_25 = arith.constant 9.99999974E-5 : f32
    %cst_26 = arith.constant 0.999899983 : f32
    %59 = vector.broadcast %cst_25 : f32 to vector<16x128xf32>
    %60 = arith.maximumf %59, %48 : vector<16x128xf32>
    %61 = vector.broadcast %cst_26 : f32 to vector<16x128xf32>
    %62 = arith.minimumf %61, %60 : vector<16x128xf32>
    %cst_27 = arith.constant 1.000000e+00 : f32
    %63 = vector.broadcast %cst_27 : f32 to vector<16x128xf32>
    %64 = arith.subf %63, %62 : vector<16x128xf32>
    %c0_28 = arith.constant 0 : index
    %c0_29 = arith.constant 0 : index
    %c0_30 = arith.constant 0 : index
    %c0_31 = arith.constant 0 : index
    %65 = vector.load %arg5[%c0_28, %c0_29, %c0_30, %c0_31] : memref<1x2x8x128xf32, #tpu.memory_space<vmem>>, vector<1x1x8x128xf32>
    %66 = vector.shape_cast %65 : vector<1x1x8x128xf32> to vector<8x128xf32>
    %67 = arith.mulf %64, %64 : vector<16x128xf32>
    %68 = arith.mulf %53, %67 : vector<16x128xf32>
    %69 = arith.mulf %68, %20 : vector<16x128xf32>
    %70 = vector.shape_cast %69 : vector<16x128xf32> to vector<2x8x128xf32>
    %cst_32 = arith.constant dense<0.000000e+00> : vector<8x128xf32>
    %71 = vector.multi_reduction <add>, %70, %cst_32 [0] : vector<2x8x128xf32> to vector<8x128xf32>
    %72 = arith.addf %66, %71 : vector<8x128xf32>
    %c0_33 = arith.constant 0 : index
    %c0_34 = arith.constant 0 : index
    %c0_35 = arith.constant 0 : index
    %c0_36 = arith.constant 0 : index
    %73 = vector.load %arg5[%c0_33, %c0_34, %c0_35, %c0_36] : memref<1x2x8x128xf32, #tpu.memory_space<vmem>>, vector<1x1x8x128xf32>
    %74 = vector.shape_cast %73 : vector<1x1x8x128xf32> to vector<8x128xf32>
    %75 = vector.shape_cast %72 : vector<8x128xf32> to vector<1x1x8x128xf32>
    tpu.vector_store %arg5[%c0_33, %c0_34, %c0_35, %c0_36], %75 {strides = array<i32>} : memref<1x2x8x128xf32, #tpu.memory_space<vmem>>, vector<1x1x8x128xf32>,
    %c0_37 = arith.constant 0 : index
    %c0_38 = arith.constant 0 : index
    %c0_39 = arith.constant 0 : index
    %c0_40 = arith.constant 0 : index
    %76 = vector.load %arg6[%c0_37, %c0_38, %c0_39, %c0_40] : memref<1x2x8x128xf32, #tpu.memory_space<vmem>>, vector<1x1x8x128xf32>
    %77 = vector.shape_cast %76 : vector<1x1x8x128xf32> to vector<8x128xf32>
    %78 = arith.mulf %62, %62 : vector<16x128xf32>
    %79 = arith.mulf %58, %78 : vector<16x128xf32>
    %80 = arith.mulf %79, %28 : vector<16x128xf32>
    %81 = vector.shape_cast %80 : vector<16x128xf32> to vector<2x8x128xf32>
    %cst_41 = arith.constant dense<0.000000e+00> : vector<8x128xf32>
    %82 = vector.multi_reduction <add>, %81, %cst_41 [0] : vector<2x8x128xf32> to vector<8x128xf32>
    %83 = arith.addf %77, %82 : vector<8x128xf32>
    %c0_42 = arith.constant 0 : index
    %c0_43 = arith.constant 0 : index
    %c0_44 = arith.constant 0 : index
    %c0_45 = arith.constant 0 : index
    %84 = vector.load %arg6[%c0_42, %c0_43, %c0_44, %c0_45] : memref<1x2x8x128xf32, #tpu.memory_space<vmem>>, vector<1x1x8x128xf32>
    %85 = vector.shape_cast %84 : vector<1x1x8x128xf32> to vector<8x128xf32>
    %86 = vector.shape_cast %83 : vector<8x128xf32> to vector<1x1x8x128xf32>
    tpu.vector_store %arg6[%c0_42, %c0_43, %c0_44, %c0_45], %86 {strides = array<i32>} : memref<1x2x8x128xf32, #tpu.memory_space<vmem>>, vector<1x1x8x128xf32>,
    %c0_46 = arith.constant 0 : index
    %c0_47 = arith.constant 0 : index
    %87 = vector.load %arg3[%c0_46, %c0_47] : memref<16x128xf32, #tpu.memory_space<vmem>>, vector<16x128xf32>
    %cst_48 = arith.constant 0.000000e+00 : f32
    %88 = vector.shape_cast %11 : vector<16x1xi1> to vector<16x1xi1>
    %89 = vector.broadcast %88 : vector<16x1xi1> to vector<16x128xi1>
    %90 = vector.broadcast %cst_48 : f32 to vector<16x128xf32>
    %91 = arith.select %89, %87, %90 : vector<16x128xi1>, vector<16x128xf32>
    %cst_49 = arith.constant 5.000000e-01 : f32
    %92 = vector.broadcast %cst_49 : f32 to vector<16x128xf32>
    %93 = arith.mulf %92, %91 : vector<16x128xf32>
    %94 = math.tanh %93 : vector<16x128xf32>
    %cst_50 = arith.constant 5.000000e-01 : f32
    %95 = vector.broadcast %cst_50 : f32 to vector<16x128xf32>
    %96 = arith.mulf %95, %94 : vector<16x128xf32>
    %cst_51 = arith.constant 5.000000e-01 : f32
    %97 = vector.broadcast %cst_51 : f32 to vector<16x128xf32>
    %98 = arith.addf %97, %96 : vector<16x128xf32>
    %99 = math.log %98 : vector<16x128xf32>
    %cst_52 = arith.constant -9.21034049 : f32
    %cst_53 = arith.constant -1.000050e-04 : f32
    %100 = vector.broadcast %cst_52 : f32 to vector<16x128xf32>
    %101 = arith.maximumf %100, %99 : vector<16x128xf32>
    %102 = vector.broadcast %cst_53 : f32 to vector<16x128xf32>
    %103 = arith.minimumf %102, %101 : vector<16x128xf32>
    %104 = arith.subf %99, %91 : vector<16x128xf32>
    %cst_54 = arith.constant -9.21034049 : f32
    %cst_55 = arith.constant -1.000050e-04 : f32
    %105 = vector.broadcast %cst_54 : f32 to vector<16x128xf32>
    %106 = arith.maximumf %105, %104 : vector<16x128xf32>
    %107 = vector.broadcast %cst_55 : f32 to vector<16x128xf32>
    %108 = arith.minimumf %107, %106 : vector<16x128xf32>
    %cst_56 = arith.constant 9.99999974E-5 : f32
    %cst_57 = arith.constant 0.999899983 : f32
    %109 = vector.broadcast %cst_56 : f32 to vector<16x128xf32>
    %110 = arith.maximumf %109, %98 : vector<16x128xf32>
    %111 = vector.broadcast %cst_57 : f32 to vector<16x128xf32>
    %112 = arith.minimumf %111, %110 : vector<16x128xf32>
    %cst_58 = arith.constant 1.000000e+00 : f32
    %113 = vector.broadcast %cst_58 : f32 to vector<16x128xf32>
    %114 = arith.subf %113, %112 : vector<16x128xf32>
    %c0_59 = arith.constant 0 : index
    %c1 = arith.constant 1 : index
    %c0_60 = arith.constant 0 : index
    %c0_61 = arith.constant 0 : index
    %115 = vector.load %arg5[%c0_59, %c1, %c0_60, %c0_61] : memref<1x2x8x128xf32, #tpu.memory_space<vmem>>, vector<1x1x8x128xf32>
    %116 = vector.shape_cast %115 : vector<1x1x8x128xf32> to vector<8x128xf32>
    %117 = arith.mulf %114, %114 : vector<16x128xf32>
    %118 = arith.mulf %103, %117 : vector<16x128xf32>
    %119 = arith.mulf %118, %20 : vector<16x128xf32>
    %120 = vector.shape_cast %119 : vector<16x128xf32> to vector<2x8x128xf32>
    %cst_62 = arith.constant dense<0.000000e+00> : vector<8x128xf32>
    %121 = vector.multi_reduction <add>, %120, %cst_62 [0] : vector<2x8x128xf32> to vector<8x128xf32>
    %122 = arith.addf %116, %121 : vector<8x128xf32>
    %c0_63 = arith.constant 0 : index
    %c1_64 = arith.constant 1 : index
    %c0_65 = arith.constant 0 : index
    %c0_66 = arith.constant 0 : index
    %123 = vector.load %arg5[%c0_63, %c1_64, %c0_65, %c0_66] : memref<1x2x8x128xf32, #tpu.memory_space<vmem>>, vector<1x1x8x128xf32>
    %124 = vector.shape_cast %123 : vector<1x1x8x128xf32> to vector<8x128xf32>
    %125 = vector.shape_cast %122 : vector<8x128xf32> to vector<1x1x8x128xf32>
    tpu.vector_store %arg5[%c0_63, %c1_64, %c0_65, %c0_66], %125 {strides = array<i32>} : memref<1x2x8x128xf32, #tpu.memory_space<vmem>>, vector<1x1x8x128xf32>,
    %c0_67 = arith.constant 0 : index
    %c1_68 = arith.constant 1 : index
    %c0_69 = arith.constant 0 : index
    %c0_70 = arith.constant 0 : index
    %126 = vector.load %arg6[%c0_67, %c1_68, %c0_69, %c0_70] : memref<1x2x8x128xf32, #tpu.memory_space<vmem>>, vector<1x1x8x128xf32>
    %127 = vector.shape_cast %126 : vector<1x1x8x128xf32> to vector<8x128xf32>
    %128 = arith.mulf %112, %112 : vector<16x128xf32>
    %129 = arith.mulf %108, %128 : vector<16x128xf32>
    %130 = arith.mulf %129, %28 : vector<16x128xf32>
    %131 = vector.shape_cast %130 : vector<16x128xf32> to vector<2x8x128xf32>
    %cst_71 = arith.constant dense<0.000000e+00> : vector<8x128xf32>
    %132 = vector.multi_reduction <add>, %131, %cst_71 [0] : vector<2x8x128xf32> to vector<8x128xf32>
    %133 = arith.addf %127, %132 : vector<8x128xf32>
    %c0_72 = arith.constant 0 : index
    %c1_73 = arith.constant 1 : index
    %c0_74 = arith.constant 0 : index
    %c0_75 = arith.constant 0 : index
    %134 = vector.load %arg6[%c0_72, %c1_73, %c0_74, %c0_75] : memref<1x2x8x128xf32, #tpu.memory_space<vmem>>, vector<1x1x8x128xf32>
    %135 = vector.shape_cast %134 : vector<1x1x8x128xf32> to vector<8x128xf32>
    %136 = vector.shape_cast %133 : vector<8x128xf32> to vector<1x1x8x128xf32>
    tpu.vector_store %arg6[%c0_72, %c1_73, %c0_74, %c0_75], %136 {strides = array<i32>} : memref<1x2x8x128xf32, #tpu.memory_space<vmem>>, vector<1x1x8x128xf32>,
    return
  }
  func.func @transform_0(%arg0: i32, %arg1: i32) -> (i32, i32) {
    %c2_i32 = arith.constant 2 : i32
    %0 = arith.muli %arg0, %c2_i32 : i32
    %1 = arith.addi %0, %arg1 : i32
    %c1_i32 = arith.constant 1 : i32
    %2 = arith.minsi %1, %c1_i32 : i32
    %c0_i32 = arith.constant 0 : i32
    %c0_i32_0 = arith.constant 0 : i32
    return %2, %c0_i32 : i32, i32
  }
  func.func @transform_1(%arg0: i32, %arg1: i32) -> (i32, i32) {
    %c2_i32 = arith.constant 2 : i32
    %0 = arith.muli %arg0, %c2_i32 : i32
    %1 = arith.addi %0, %arg1 : i32
    %c1_i32 = arith.constant 1 : i32
    %2 = arith.minsi %1, %c1_i32 : i32
    %c0_i32 = arith.constant 0 : i32
    %c0_i32_0 = arith.constant 0 : i32
    return %2, %c0_i32 : i32, i32
  }
  func.func @transform_2(%arg0: i32, %arg1: i32) -> (i32, i32) {
    %c2_i32 = arith.constant 2 : i32
    %0 = arith.muli %arg0, %c2_i32 : i32
    %1 = arith.addi %0, %arg1 : i32
    %c1_i32 = arith.constant 1 : i32
    %2 = arith.minsi %1, %c1_i32 : i32
    %c0_i32 = arith.constant 0 : i32
    %c0_i32_0 = arith.constant 0 : i32
    return %2, %c0_i32 : i32, i32
  }
  func.func @transform_3(%arg0: i32, %arg1: i32) -> (i32, i32, i32, i32) {
    %c0_i32 = arith.constant 0 : i32
    %c0_i32_0 = arith.constant 0 : i32
    %c0_i32_1 = arith.constant 0 : i32
    %c0_i32_2 = arith.constant 0 : i32
    return %arg0, %c0_i32, %c0_i32_0, %c0_i32_1 : i32, i32, i32, i32
  }
  func.func @transform_4(%arg0: i32, %arg1: i32) -> (i32, i32, i32, i32) {
    %c0_i32 = arith.constant 0 : i32
    %c0_i32_0 = arith.constant 0 : i32
    %c0_i32_1 = arith.constant 0 : i32
    %c0_i32_2 = arith.constant 0 : i32
    return %arg0, %c0_i32, %c0_i32_0, %c0_i32_1 : i32, i32, i32, i32
  }
  func.func @transform_5(%arg0: i32, %arg1: i32) -> (i32, i32, i32) {
    %c0_i32 = arith.constant 0 : i32
    %c0_i32_0 = arith.constant 0 : i32
    %c0_i32_1 = arith.constant 0 : i32
    return %arg0, %c0_i32, %c0_i32_0 : i32, i32, i32
  }
}

</mosaic_0001>

<bundles_post_ra>
// kernel: tpu_custom_call.1
= control target key start
LH: loop header
LB: loop body
LE: loop exit
PB: predicated region body
PF: predicated region fallthrough
CT: control target
= control target key end

     0   :  { %11 = vsyncpa [#allocation3], 0  ;;  %s1411_s0 = inlined_call_operand.hbm [shape: f32[24,128], index: 0, kind: input, shape index: {}]   ;;  %s1412_s1 = inlined_call_operand.hbm [shape: f32[24,128], index: 1, kind: input, shape index: {}]   ;;  %s1413_s2 = inlined_call_operand.hbm [shape: f32[24,128], index: 2, kind: input, shape index: {}]   ;;  %s1414_s3 = inlined_call_operand.hbm [shape: f32[1,2,8,128], index: 3, kind: output, shape index: {0}]   ;;  %s1415_s4 = inlined_call_operand.hbm [shape: f32[1,2,8,128], index: 4, kind: output, shape index: {1}]   ;;  %s1416_s5 = inlined_call_operand.hbm [shape: f32[1,8,128], index: 5, kind: output, shape index: {2}]  }
   0x1   :  { %13 = vsyncpa [#allocation3 + $0x1], 0 }
   0x2   :  { %14 = vsyncpa [#allocation6], 0 }
   0x3   :  { %16 = vsyncpa [#allocation6 + $0x1], 0 }
   0x4   :  { %17 = vsyncpa [#allocation4], 0 }
   0x5   :  { %18 = vsyncpa [#allocation10], 0  ;;  %s1133_s18 = smov 0   ;;  %s1135_s19 = smov 0  }
   0x6   :  { %s1137_s20 = smov 0   ;;  %s1139_s21 = smov 0  }
   0x7   :  { %s1141_s22 = smov 0   ;;  %s1143_s23 = smov 0  }
   0x8 LB: > { %s33_s24 = sadd.s32 1, %s1081_s22  ;;  %p42_p1 = scmp.lt.s32.totalorder %s1081_s22, 1  ;;  %s1085_s23 = sphi %s1143_s23, %s24_s23   ;;  %s1081_s22 = sphi %s1141_s22, %s1423_s22   ;;  %s1077_s21 = sphi %s1139_s21, %s1422_s21   ;;  %s1073_s20 = sphi %s1137_s20, %s1421_s20   ;;  %s1069_s19 = sphi %s1135_s19, %s1420_s19   ;;  %s1065_s18 = sphi %s1133_s18, %s1419_s18  }
   0x9   : > { %p34_p0 = scmp.ge.s32.totalorder %s33_s24, 2  ;;  %s1164_s25 = sadd.s32 4294967295, %s1085_s23  }
   0xa   : > { %p58_p2 = scmp.ne.s32.totalorder %s1073_s20, %s1069_s19  ;;  %p59_p4 = scmp.eq.s32.totalorder %s1085_s23, 0 }
   0xb   : > { %s1425_s24 = smov (%p34_p0, %s33_s24), 0  ;;  %p64_p5 = scmp.ne.s32.totalorder %s1069_s19, %s1065_s18 }
   0xc   : > { %s1171_s26 = scalar_select %p42_p1, %s1081_s22, 1 }
   0xd   : > { %p46_p3 = scmp.lt.s32.totalorder %s1425_s24, 1  ;;  %p65_p6 = scmp.eq.s32.totalorder %s1164_s25, 0 }
   0xe   : > { %p1178_p7 = por %p59_p4, %p58_p2  ;;  %s51_s6 = sadd.s32 1, %s1073_s20 }
   0xf   : > { %s47_s27 = scalar_select %p46_p3, %s1425_s24, 1 }
  0x10   : > { %p1182_p8 = por %p65_p6, %p64_p5  ;;  %p736_p10 = scmp.ge.s32.totalorder %s1085_s23, 2 }
  0x11   : > { %s48_s30 = ssub.s32 %s1171_s26, %s47_s27 }
  0x12   : > { %p49_p9 = scmp.eq.s32.totalorder %s48_s30, 0  ;;  %230 = sbr.rel (%p736_p10) target bundleno = 119 (0x77), region = 16 }
  0x14   : > { %s1189_s7 = scalar_select %p49_p9, %s1073_s20, %s51_s6  }
  0x17   : > { %233 = sbr.rel (!%p1178_p7) target bundleno = 55 (0x37), region = 20  ;;  %s234_s8 = sand.u32 (%p1178_p7), 1, %s1073_s20  }
  0x18   : > { %s738_s9 = sshll.u32 (%p1178_p7), %s1171_s26, 1  ;;  %s737_s10 = sshll.u32 (%p1178_p7), %s234_s8, 4 }
  0x19   : > { %s244_s11 = ssub.s32 (%p1178_p7), 3, %s738_s9  ;;  %s1199_s14 = scalar_lea.sflag (%p1178_p7), [#allocation3], %s234_s8 }
  0x1a   : > { %p245_p11 = scmp.lt.s32.totalorder (%p1178_p7), %s244_s11, 2  ;;  %s238_s15 = scalar_lea.vmem (%p1178_p7), [#allocation2], %s737_s10 }
  0x1c   : > { %s1427_s11 = smov (!%p245_p11, %s244_s11), 2 }
  0x1d   : > { %s1196_s12 = sshll.u32 %s1427_s11, 7 }
  0x1e   : > { %s249_s13 = ssub.s32 256, %s1196_s12 }
  0x1f   : > { %250 = vsyncadd %s1199_s14, %s249_s13  ;;  %p740_p12 = scmp.ne.s32.totalorder %s1196_s12, 0  ;;  %s772_s16 = sshll.u32 %s1171_s26, 8 }
  0x20   : > { %s1207_s27 = scalar_lea.hbm %s1411_s0, %s772_s16  ;;  %s255_s30 = sshll.u32 %s238_s15, 4  ;;  %s1209_s30 = int_to_ptr.vmem [resolvable:$true] %s255_s30 }
  0x21   : > { %s873_s6 = scalar_lea.hbm %s1207_s27, %s1196_s12  ;;  %s877_s10 = scalar_lea.hbm %s1411_s0, 384 }
  0x22   : > { %p874_p13 = scmp.ne.s32.totalorder %s1207_s27, %s873_s6  ;;  %p879_p2 = scmp.lt.s32.totalorder %s877_s10, %s873_s6 }
  0x24   : > { %p875_p0 = pnand %p874_p13, %p740_p12 }
  0x26   : > { %p876_p1 = pneg %p875_p0 }
  0x28   : > { %p881_p3 = pnand %p879_p2, %p876_p1 }
  0x2a   : > { %884 = shalt.err (!%p881_p3)
}
  0x2b   : > { %s885_s11 = scalar_lea.vmem %s1209_s30, %s1196_s12  ;;  %s1087_s13 = smov [#allocation2]  }
  0x2c   : > { %p886_p4 = scmp.ne.s32.totalorder %s1209_s30, %s885_s11  ;;  %s889_s15 = sshll.u32 %s1087_s13, 4  ;;  %s890_s15 = int_to_ptr.vmem [resolvable:$false] %s889_s15 }
  0x2d   : > { %s891_s16 = scalar_lea.vmem %s890_s15, 512  ;;  %p892_p9 = scmp.lt.s32.totalorder %s1209_s30, %s890_s15 }
  0x2e   : > { %p887_p5 = pnand %p886_p4, %p740_p12  ;;  %p893_p10 = scmp.lt.s32.totalorder %s891_s16, %s885_s11 }
  0x30   : > { %p888_p6 = pneg %p887_p5  ;;  %p894_p11 = por %p893_p10, %p892_p9 }
  0x32   : > { %p895_p13 = pnand %p894_p11, %p888_p6 }
  0x34   : > { %898 = shalt.err (!%p895_p13)
}
  0x35   : > { %s1088_s17 = smov 128   ;;  %s1089_s18 = smov 8  }
  0x36   : > { %261 = dma.hbm_to_vmem [thread:$0]  (%p740_p12), %s1207_s27, %s1196_s12, %s1209_s30, %s1199_s14, %s1088_s17, %s1088_s17, %s1089_s18  }
  0x37 PF: > { %264 = sbr.rel (!%p1178_p7) target bundleno = 87 (0x57), region = 24  ;;  %s265_s6 = sand.u32 (%p1178_p7), 1, %s1085_s23  }
  0x38   : > { %s267_s8 = sand.u32 (%p1178_p7), 1, %s1073_s20   ;;  %s745_s10 = sshll.u32 (%p1178_p7), %s1171_s26, 1 }
  0x39   : > { %s744_s9 = sshll.u32 (%p1178_p7), %s267_s8, 4  ;;  %s275_s11 = ssub.s32 (%p1178_p7), 3, %s745_s10 }
  0x3a   : > { %p276_p0 = scmp.lt.s32.totalorder (%p1178_p7), %s275_s11, 2  ;;  %s1239_s16 = scalar_lea.sflag (%p1178_p7), [#allocation6], %s265_s6 }
  0x3b   : > { %s269_s12 = scalar_lea.vmem (%p1178_p7), [#allocation5], %s744_s9 }
  0x3c   : > { %s1429_s11 = smov (!%p276_p0, %s275_s11), 2 }
  0x3d   : > { %s1236_s13 = sshll.u32 %s1429_s11, 7 }
  0x3e   : > { %s280_s15 = ssub.s32 256, %s1236_s13 }
  0x3f   : > { %281 = vsyncadd %s1239_s16, %s280_s15  ;;  %p747_p12 = scmp.ne.s32.totalorder %s1236_s13, 0  ;;  %s773_s14 = sshll.u32 %s1171_s26, 8 }
  0x40   : > { %s1247_s17 = scalar_lea.hbm %s1412_s1, %s773_s14  ;;  %s286_s18 = sshll.u32 %s269_s12, 4  ;;  %s1249_s18 = int_to_ptr.vmem [resolvable:$true] %s286_s18 }
  0x41   : > { %s899_s6 = scalar_lea.hbm %s1247_s17, %s1236_s13  ;;  %s903_s10 = scalar_lea.hbm %s1412_s1, 384 }
  0x42   : > { %p900_p1 = scmp.ne.s32.totalorder %s1247_s17, %s899_s6  ;;  %p905_p4 = scmp.lt.s32.totalorder %s903_s10, %s899_s6 }
  0x44   : > { %p901_p2 = pnand %p900_p1, %p747_p12 }
  0x46   : > { %p902_p3 = pneg %p901_p2 }
  0x48   : > { %p907_p5 = pnand %p905_p4, %p902_p3 }
  0x4a   : > { %910 = shalt.err (!%p907_p5)
}
  0x4b   : > { %s911_s11 = scalar_lea.vmem %s1249_s18, %s1236_s13  ;;  %s1090_s15 = smov [#allocation5]  }
  0x4c   : > { %p912_p6 = scmp.ne.s32.totalorder %s1249_s18, %s911_s11  ;;  %s915_s12 = sshll.u32 %s1090_s15, 4  ;;  %s916_s12 = int_to_ptr.vmem [resolvable:$false] %s915_s12 }
  0x4d   : > { %s917_s14 = scalar_lea.vmem %s916_s12, 512  ;;  %p918_p11 = scmp.lt.s32.totalorder %s1249_s18, %s916_s12 }
  0x4e   : > { %p913_p9 = pnand %p912_p6, %p747_p12  ;;  %p919_p13 = scmp.lt.s32.totalorder %s917_s14, %s911_s11 }
  0x50   : > { %p914_p10 = pneg %p913_p9  ;;  %p920_p0 = por %p919_p13, %p918_p11 }
  0x52   : > { %p921_p1 = pnand %p920_p0, %p914_p10 }
  0x54   : > { %924 = shalt.err (!%p921_p1)
}
  0x55   : > { %s1091_s27 = smov 128   ;;  %s1092_s30 = smov 8  }
  0x56   : > { %292 = dma.hbm_to_vmem [thread:$0]  (%p747_p12), %s1247_s17, %s1236_s13, %s1249_s18, %s1239_s16, %s1091_s27, %s1091_s27, %s1092_s30  }
  0x57 PF: > { %295 = sbr.rel (!%p1178_p7) target bundleno = 119 (0x77), region = 28  ;;  %s296_s6 = sand.u32 (%p1178_p7), 1, %s1085_s23  }
  0x58   : > { %s298_s8 = sand.u32 (%p1178_p7), 1, %s1073_s20   ;;  %s752_s10 = sshll.u32 (%p1178_p7), %s1171_s26, 1 }
  0x59   : > { %s751_s9 = sshll.u32 (%p1178_p7), %s298_s8, 4  ;;  %s306_s11 = ssub.s32 (%p1178_p7), 3, %s752_s10 }
  0x5a   : > { %p307_p2 = scmp.lt.s32.totalorder (%p1178_p7), %s306_s11, 2  ;;  %s1279_s14 = scalar_lea.sflag (%p1178_p7), [#allocation6], %s296_s6 }
  0x5b   : > { %s300_s13 = scalar_lea.vmem (%p1178_p7), [#allocation7], %s751_s9 }
  0x5c   : > { %s1431_s11 = smov (!%p307_p2, %s306_s11), 2 }
  0x5d   : > { %s1276_s15 = sshll.u32 %s1431_s11, 7 }
  0x5e   : > { %s311_s12 = ssub.s32 256, %s1276_s15 }
  0x5f   : > { %312 = vsyncadd %s1279_s14, %s311_s12  ;;  %p754_p7 = scmp.ne.s32.totalorder %s1276_s15, 0  ;;  %s774_s28 = sshll.u32 %s1171_s26, 8 }
  0x60   : > { %s1287_s18 = scalar_lea.hbm %s1413_s2, %s774_s28  ;;  %s317_s27 = sshll.u32 %s300_s13, 4  ;;  %s1289_s27 = int_to_ptr.vmem [resolvable:$true] %s317_s27 }
  0x61   : > { %s925_s30 = scalar_lea.hbm %s1287_s18, %s1276_s15  ;;  %s929_s9 = scalar_lea.hbm %s1413_s2, 384 }
  0x62   : > { %p926_p12 = scmp.ne.s32.totalorder %s1287_s18, %s925_s30  ;;  %p931_p5 = scmp.lt.s32.totalorder %s929_s9, %s925_s30 }
  0x64   : > { %p927_p3 = pnand %p926_p12, %p754_p7 }
  0x66   : > { %p928_p4 = pneg %p927_p3 }
  0x68   : > { %p933_p6 = pnand %p931_p5, %p928_p4 }
  0x6a   : > { %936 = shalt.err (!%p933_p6)
}
  0x6b   : > { %s937_s26 = scalar_lea.vmem %s1289_s27, %s1276_s15  ;;  %s1093_s10 = smov [#allocation7]  }
  0x6c   : > { %p938_p9 = scmp.ne.s32.totalorder %s1289_s27, %s937_s26  ;;  %s941_s11 = sshll.u32 %s1093_s10, 4  ;;  %s942_s11 = int_to_ptr.vmem [resolvable:$false] %s941_s11 }
  0x6d   : > { %s943_s12 = scalar_lea.vmem %s942_s11, 512  ;;  %p944_p13 = scmp.lt.s32.totalorder %s1289_s27, %s942_s11 }
  0x6e   : > { %p939_p10 = pnand %p938_p9, %p754_p7  ;;  %p945_p0 = scmp.lt.s32.totalorder %s943_s12, %s937_s26 }
  0x70   : > { %p940_p11 = pneg %p939_p10  ;;  %p946_p1 = por %p945_p0, %p944_p13 }
  0x72   : > { %p947_p2 = pnand %p946_p1, %p940_p11 }
  0x74   : > { %950 = shalt.err (!%p947_p2)
}
  0x75   : > { %s1094_s13 = smov 128   ;;  %s1095_s28 = smov 8  }
  0x76   : > { %323 = dma.hbm_to_vmem [thread:$0]  (%p754_p7), %s1287_s18, %s1276_s15, %s1289_s27, %s1279_s14, %s1094_s13, %s1094_s13, %s1095_s28  }
  0x77 PF: > { %p758_p12 = scmp.ge.s32.totalorder %s1085_s23, 1  ;;  %p325_p3 = scmp.lt.s32.totalorder %s1085_s23, 3 }
  0x79   : > { %p326_p4 = pnand %p758_p12, %p325_p3 }
  0x7a   : > { %s331_s16 = sand.u32 (!%p326_p4), 1, %s1069_s19  }
  0x7b   : > { %329 = sbr.rel (%p326_p4) target bundleno = 233 (0xe9), region = 32  ;;  %s1314_s17 = sshll.u32 (!%p326_p4), %s331_s16, 4 }
  0x7c   : > { %s332_s30 = scalar_lea.sflag (!%p326_p4), [#allocation3], %s331_s16  ;;  %s335_s6 = scalar_lea.vmem (!%p326_p4), [#allocation2], %s1314_s17 }
  0x80   : > { %1048 = dma.done.wait (%p1182_p8), %s332_s30, 256  }
  0x81   : > { %1050 = vsyncadd (%p1182_p8), %s332_s30, 4294967040  ;;  %s340_s15 = sand.u32 1, %s1164_s25   ;;  %s344_s18 = scalar_lea.vmem [#allocation5], %s1314_s17 }
  0x82   : > { %s341_s14 = scalar_lea.sflag [#allocation6], %s340_s15 }
  0x83   : > { %1052 = dma.done.wait (%p1182_p8), %s341_s14, 512  }
  0x84   : > { %1054 = vsyncadd (%p1182_p8), %s341_s14, 4294966784  ;;  %s353_s27 = scalar_lea.vmem [#allocation7], %s1314_s17  ;;  %p762_p7 = scmp.ne.s32.totalorder %s1077_s21, 0 }
  0x86   : > { %415 = sbr.rel (%p762_p7) target bundleno = 143 (0x8f), region = 48 }
  0x8b   : > { %v1096_v0 = vmov 0.0  }
  0x8c   : > { %416 = vst [vmem:[#allocation8] sm:$0xff] %v1096_v0  ;;  %417 = vst [vmem:[#allocation8 + $0x8] sm:$0xff] %v1096_v0 }
  0x8d   : > { %418 = vst [vmem:[#allocation9] sm:$0xff] %v1096_v0  ;;  %419 = vst [vmem:[#allocation9 + $0x8] sm:$0xff] %v1096_v0 }
  0x8e   : > { %420 = vst [vmem:[#allocation11] sm:$0xff] %v1096_v0 }
  0x8f PF: > { %s763_s8 = sshll.u32 %s1077_s21, 4  ;;  %v426_v1 = vlaneseq  ;;  %v458_v6 = vld [vmem:[%s335_s6] sm:$0xff]  ;;  %v459_v9 = vld [vmem:[%s335_s6 + $0x8] sm:$0xff]  ;;  %v1097_v23 = vmov 0.0   ;;  %s1098_s21 = smov [#allocation8]  }
  0x90   : > { %v429_v2 = vstv %s763_s8  ;;  %v510_v7 = vld [vmem:[%s344_s18] sm:$0xff]  ;;  %v511_v10 = vld [vmem:[%s344_s18 + $0x8] sm:$0xff]  ;;  %s573_s29 = sshll.u32 %s1098_s21, 4  ;;  %p790_p8 = scmp.eq.s32.totalorder %s1164_s25, 1  ;;  %s574_s29 = int_to_ptr.vmem [resolvable:$true] %s573_s29 }
  0x91   : > { %v427_v3 = vshrl.u32 %v426_v1, 7  ;;  %v421_v11 = vld [vmem:[%s353_s27] sm:$0xff]  ;;  %v422_v12 = vld [vmem:[%s353_s27 + $0x8] sm:$0xff]  ;;  %s1099_s9 = smov [#allocation9]   ;;  %s1100_s10 = smov [#allocation11]  }
  0x92   : > { %s589_s26 = sshll.u32 %s1099_s9, 4  ;;  %s605_s11 = sshll.u32 %s1100_s10, 4  ;;  %s590_s26 = int_to_ptr.vmem [resolvable:$true] %s589_s26  ;;  %s1357_s11 = int_to_ptr.vmem [resolvable:$true] %s605_s11 }
  0x93   : > { %v428_v4 = vadd.s32 8, %v427_v3  ;;  %v430_v5 = vadd.s32 %v429_v2, %v427_v3  ;;  %s951_s12 = scalar_lea.vmem %s574_s29, 256  ;;  %p958_p10 = scmp.lt.s32.totalorder %s574_s29, %s574_s29 }
  0x94   : > { %p952_p5 = scmp.ne.s32.totalorder %s574_s29, %s951_s12  ;;  %p959_p11 = scmp.lt.s32.totalorder %s951_s12, %s951_s12 }
  0x95   : > { %v431_v8 = vadd.s32 %v429_v2, %v428_v4  ;;  %vm432_vm0 = vcmp.lt.s32.totalorder %v430_v5, 24  ;;  %v454_v26 = vld [vmem:[#allocation11] sm:$0xff] }
  0x96   : > { %v1330_v13 = vsel %vm432_vm0, %v458_v6, 0.0  ;;  %v1332_v14 = vsel %vm432_vm0, %v510_v7, 0.0  ;;  %v438_v19 = vsel %vm432_vm0, %v421_v11, 2.0  ;;  %p953_p6 = pnand %p952_p5, %p790_p8  ;;  %p960_p13 = por %p959_p11, %p958_p10 }
  0x97   : > { %vm433_vm1 = vcmp.lt.s32.totalorder %v431_v8, 24  ;;  %v462_v15 = vmul.f32 0.5, %v1330_v13  ;;  %v514_v18 = vmul.f32 0.5, %v1332_v14  ;;  %vm440_vm2 = vcmp.eq.f32.partialorder %v438_v19, 1.0 }
  0x98   : > { %v1335_v16 = vsel %vm433_vm1, %v459_v9, 0.0  ;;  %v1337_v17 = vsel %vm433_vm1, %v511_v10, 0.0  ;;  %v439_v20 = vsel %vm433_vm1, %v422_v12, 2.0  ;;  %v1342_v24 = vsel %vm440_vm2, 1.0, %v1097_v23  ;;  %p954_p9 = pneg %p953_p6 }
  0x99   : > { %v463_v21 = vmul.f32 0.5, %v1335_v16  ;;  %857 = vtanh.f32 %v462_v15  ;;  %v515_v22 = vmul.f32 0.5, %v1337_v17  ;;  %vm441_vm3 = vcmp.eq.f32.partialorder %v439_v20, 1.0 }
  0x9a   : > { %v1344_v25 = vsel %vm441_vm3, 1.0, %v1097_v23  ;;  %v444_v40 = vsub.f32 1.0, %v438_v19  ;;  %v445_v41 = vsub.f32 1.0, %v439_v20  ;;  %vm448_vm4 = vcmp.lt.f32.partialorder %v438_v19, 1.0  ;;  %p961_p0 = pnand %p960_p13, %p954_p9 }
  0x9b   : > { %859 = vtanh.f32 %v463_v21  ;;  %v455_v27 = vadd.f32 %v1344_v25, %v1342_v24  ;;  %vm449_vm5 = vcmp.lt.f32.partialorder %v439_v20, 1.0 }
  0x9c   : > { %861 = vtanh.f32 %v514_v18  ;;  %v446_v46 = vmul.f32 %v444_v40, %v444_v40  ;;  %v447_v47 = vmul.f32 %v445_v41, %v445_v41 }
  0x9d   : > { %863 = vtanh.f32 %v515_v22  ;;  %v456_v28 = vadd.f32 %v455_v27, %v454_v26 }
  0x9e   : > { %v450_v52 = vmul.f32 %v446_v46, %v446_v46  ;;  %v451_v53 = vmul.f32 %v447_v47, %v447_v47 }
  0x9f   : > { %457 = vst [vmem:[#allocation11] sm:$0xff] %v456_v28 }
  0xa0   : > { %v452_v59 = vsel %vm448_vm4, %v450_v52, 0.0  ;;  %v453_v60 = vsel %vm449_vm5, %v451_v53, 0.0  ;;  %v543_v53 = vld [vmem:[#allocation8 + $0x8] sm:$0xff] }
  0xa6   : > { %v858_v29 = vpop.eup %857 }
  0xa7   : > { %v466_v31 = vmul.f32 0.5, %v858_v29 }
  0xa8   : > { %v860_v30 = vpop.eup %859 }
  0xa9   : > { %v862_v32 = vpop.eup %861  ;;  %v467_v33 = vmul.f32 0.5, %v860_v30  ;;  %v468_v35 = vadd.f32 0.5, %v466_v31 }
  0xaa   : > { %v864_v34 = vpop.eup %863  ;;  %v518_v36 = vmul.f32 0.5, %v862_v32 }
  0xab   : > { %v469_v37 = vadd.f32 0.5, %v467_v33  ;;  %v519_v38 = vmul.f32 0.5, %v864_v34  ;;  %865 = vlog2.f32 %v468_v35  ;;  %v484_v43 = vmax.f32 %v468_v35, 0.0001 }
  0xac   : > { %v520_v39 = vadd.f32 0.5, %v518_v36 }
  0xad   : > { %867 = vlog2.f32 %v469_v37  ;;  %v521_v42 = vadd.f32 0.5, %v519_v38  ;;  %v485_v44 = vmax.f32 %v469_v37, 0.0001  ;;  %v486_v49 = vmin.f32 %v484_v43, 0.9999 }
  0xae   : > { %869 = vlog2.f32 %v520_v39  ;;  %v536_v45 = vmax.f32 %v520_v39, 0.0001 }
  0xaf   : > { %871 = vlog2.f32 %v521_v42  ;;  %v537_v48 = vmax.f32 %v521_v42, 0.0001  ;;  %v487_v50 = vmin.f32 %v485_v44, 0.9999  ;;  %v488_v55 = vsub.f32 1.0, %v486_v49 }
  0xb0   : > { %v538_v51 = vmin.f32 %v536_v45, 0.9999  ;;  %v501_v0 = vmul.f32 %v486_v49, %v486_v49  ;;  %v490_v45 = vld [vmem:[#allocation8] sm:$0xff] }
  0xb1   : > { %v539_v54 = vmin.f32 %v537_v48, 0.9999  ;;  %v489_v56 = vsub.f32 1.0, %v487_v50  ;;  %v502_v1 = vmul.f32 %v487_v50, %v487_v50  ;;  %v491_v6 = vmul.f32 %v488_v55, %v488_v55 }
  0xb2   : > { %v540_v57 = vsub.f32 1.0, %v538_v51  ;;  %v555_v2 = vmul.f32 %v538_v51, %v538_v51  ;;  %v500_v51 = vld [vmem:[#allocation9] sm:$0xff] }
  0xb3   : > { %v541_v61 = vsub.f32 1.0, %v539_v54  ;;  %v556_v5 = vmul.f32 %v539_v54, %v539_v54  ;;  %v492_v7 = vmul.f32 %v489_v56, %v489_v56 }
  0xb4   : > { %v544_v12 = vmul.f32 %v540_v57, %v540_v57 }
  0xb5   : > { %v545_v20 = vmul.f32 %v541_v61, %v541_v61 }
  0xb8   : > { %v866_v58 = vpop.eup %865 }
  0xb9   : > { %v471_v63 = vmul.f32 0.6931472, %v866_v58  ;;  %v554_v58 = vld [vmem:[#allocation9 + $0x8] sm:$0xff] }
  0xba   : > { %v868_v62 = vpop.eup %867 }
  0xbb   : > { %v870_v3 = vpop.eup %869  ;;  %v473_v4 = vmul.f32 0.6931472, %v868_v62  ;;  %v478_v9 = vsub.f32 %v471_v63, %v1330_v13  ;;  %v474_v11 = vmax.f32 %v471_v63, -9.2103405 }
  0xbc   : > { %v872_v8 = vpop.eup %871  ;;  %v523_v10 = vmul.f32 0.6931472, %v870_v3 }
  0xbd   : > { %v479_v15 = vsub.f32 %v473_v4, %v1335_v16  ;;  %v525_v18 = vmul.f32 0.6931472, %v872_v8  ;;  %v475_v19 = vmax.f32 %v473_v4, -9.2103405  ;;  %v480_v21 = vmax.f32 %v478_v9, -9.2103405 }
  0xbe   : > { %v530_v22 = vsub.f32 %v523_v10, %v1332_v14  ;;  %v476_v23 = vmin.f32 %v474_v11, -0.000100005  ;;  %v526_v26 = vmax.f32 %v523_v10, -9.2103405 }
  0xbf   : > { %v481_v27 = vmax.f32 %v479_v15, -9.2103405  ;;  %v531_v28 = vsub.f32 %v525_v18, %v1337_v17  ;;  %v477_v29 = vmin.f32 %v475_v19, -0.000100005  ;;  %v527_v30 = vmax.f32 %v525_v18, -9.2103405 }
  0xc0   : > { %v482_v31 = vmin.f32 %v480_v21, -0.000100005  ;;  %v532_v13 = vmax.f32 %v530_v22, -9.2103405  ;;  %v493_v32 = vmul.f32 %v491_v6, %v476_v23  ;;  %v528_v33 = vmin.f32 %v526_v26, -0.000100005 }
  0xc1   : > { %v483_v34 = vmin.f32 %v481_v27, -0.000100005  ;;  %v533_v35 = vmax.f32 %v531_v28, -9.2103405  ;;  %v494_v16 = vmul.f32 %v492_v7, %v477_v29  ;;  %v529_v36 = vmin.f32 %v527_v30, -0.000100005 }
  0xc2   : > { %v503_v37 = vmul.f32 %v501_v0, %v482_v31  ;;  %v534_v38 = vmin.f32 %v532_v13, -0.000100005  ;;  %v495_v39 = vmul.f32 %v493_v32, %v1342_v24  ;;  %v546_v14 = vmul.f32 %v544_v12, %v528_v33 }
  0xc3   : > { %v504_v40 = vmul.f32 %v502_v1, %v483_v34  ;;  %v535_v41 = vmin.f32 %v533_v35, -0.000100005  ;;  %v496_v42 = vmul.f32 %v494_v16, %v1344_v25  ;;  %v547_v17 = vmul.f32 %v545_v20, %v529_v36 }
  0xc4   : > { %v505_v43 = vmul.f32 %v503_v37, %v452_v59  ;;  %v557_v44 = vmul.f32 %v555_v2, %v534_v38  ;;  %v548_v46 = vmul.f32 %v546_v14, %v1342_v24 }
  0xc5   : > { %v506_v47 = vmul.f32 %v504_v40, %v453_v60  ;;  %v558_v48 = vmul.f32 %v556_v5, %v535_v41  ;;  %v497_v49 = vadd.f32 %v496_v42, %v495_v39  ;;  %v549_v50 = vmul.f32 %v547_v17, %v1344_v25 }
  0xc6   : > { %v559_v52 = vmul.f32 %v557_v44, %v452_v59 }
  0xc7   : > { %v507_v54 = vadd.f32 %v506_v47, %v505_v43  ;;  %v560_v55 = vmul.f32 %v558_v48, %v453_v60  ;;  %v498_v56 = vadd.f32 %v497_v49, %v490_v45  ;;  %v550_v57 = vadd.f32 %v549_v50, %v548_v46 }
  0xc9   : > { %v508_v24 = vadd.f32 %v507_v54, %v500_v51  ;;  %v561_v61 = vadd.f32 %v560_v55, %v559_v52  ;;  %499 = vst [vmem:[#allocation8] sm:$0xff] %v498_v56  ;;  %v551_v25 = vadd.f32 %v550_v57, %v543_v53 }
  0xcb   : > { %509 = vst [vmem:[#allocation9] sm:$0xff] %v508_v24  ;;  %v562_v59 = vadd.f32 %v561_v61, %v554_v58  ;;  %552 = vst [vmem:[#allocation8 + $0x8] sm:$0xff] %v551_v25 }
  0xcc   : > { %964 = shalt.err (!%p961_p0)
}
  0xcd   : > { %s1101_s13 = smov 128   ;;  %s1102_s28 = smov 8   ;;  %563 = vst [vmem:[#allocation9 + $0x8] sm:$0xff] %v562_v59 }
  0xce   : > { %779 = dma.vmem_to_hbm [thread:$0]  (%p790_p8), %s574_s29, 256, %s1414_s3, [#allocation4], %s1101_s13, %s1101_s13, %s1102_s28  }
  0xcf   : > { %s975_s30 = scalar_lea.vmem %s590_s26, 256  ;;  %p982_p3 = scmp.lt.s32.totalorder %s590_s26, %s590_s26 }
  0xd0   : > { %p976_p1 = scmp.ne.s32.totalorder %s590_s26, %s975_s30  ;;  %p983_p4 = scmp.lt.s32.totalorder %s975_s30, %s975_s30 }
  0xd2   : > { %p977_p2 = pnand %p976_p1, %p790_p8  ;;  %p984_p7 = por %p983_p4, %p982_p3 }
  0xd4   : > { %p978_p12 = pneg %p977_p2 }
  0xd6   : > { %p985_p5 = pnand %p984_p7, %p978_p12 }
  0xd8   : > { %988 = shalt.err (!%p985_p5)
}
  0xd9   : > { %781 = dma.vmem_to_hbm [thread:$0]  (%p790_p8), %s590_s26, 256, %s1415_s4, [#allocation10], %s1101_s13, %s1101_s13, %s1102_s28  }
  0xda   : > { %s999_s14 = scalar_lea.vmem %s1357_s11, 128  ;;  %p1006_p11 = scmp.lt.s32.totalorder %s1357_s11, %s1357_s11 }
  0xdb   : > { %p1000_p6 = scmp.ne.s32.totalorder %s1357_s11, %s999_s14  ;;  %p1007_p13 = scmp.lt.s32.totalorder %s999_s14, %s999_s14 }
  0xdd   : > { %p1001_p9 = pnand %p1000_p6, %p790_p8  ;;  %p1008_p0 = por %p1007_p13, %p1006_p11 }
  0xdf   : > { %p1002_p10 = pneg %p1001_p9 }
  0xe1   : > { %p1009_p1 = pnand %p1008_p0, %p1002_p10 }
  0xe3   : > { %1012 = shalt.err (!%p1009_p1)
}
  0xe4   : > { %783 = dma.vmem_to_hbm [thread:$0]  (%p790_p8), %s1357_s11, 128, %s1416_s5, [#allocation10]  }
  0xe5   : > { %1056 = dma.done.wait (%p790_p8), [#allocation4], 256  }
  0xe6   : > { %1058 = vsyncadd (%p790_p8), [#allocation4], 4294967040 }
  0xe7   : > { %1060 = dma.done.wait (%p790_p8), [#allocation10], 384  }
  0xe8   : > { %1062 = vsyncadd (%p790_p8), [#allocation10], 4294966912 }
  0xe9 PF: > { %s24_s23 = sadd.s32 1, %s1085_s23   ;;  %s1419_s18 = smov %s1069_s19 }
  0xea   : > { %p21_p2 = scmp.ge.s32.totalorder %s24_s23, 4   ;;  %s1420_s19 = smov %s1073_s20 }
  0xeb   : > { %s1421_s20 = smov %s1189_s7  ;;  %s1422_s21 = smov %s1081_s22 }
  0xec   : > { %s1423_s22 = smov %s1425_s24  ;;  %23 = sbr.rel (!%p21_p2) target bundleno = 8 (0x8), region = 118 }
  0xf1   :  { %626 = vsyncpa [#allocation3], 1 }
  0xf2   :  { %628 = vsyncpa [#allocation3 + $0x1], 1 }
  0xf3   :  { %629 = vsyncpa [#allocation6], 1 }
  0xf4   :  { %631 = vsyncpa [#allocation6 + $0x1], 1 }
  0xf5   :  { %632 = vsyncpa [#allocation4], 1 }
  0xf6   :  { %634 = vsyncpa [#allocation4 + $0x1], 1 }
  0xf7   :  { %635 = vsyncpa [#allocation10], 1 }

</bundles_post_ra>
